<compile_context>
chip_gen: v7x
topology: tpu7x:2x2x1
jax: 0.10.0
libtpu: 0.0.40
codegen_flags: <defaults>
</compile_context>

<pallas_src>
import functools

import jax
import jax.numpy as jnp
from jax.experimental import pallas as pl
from jax.experimental.pallas import tpu as pltpu


def _logreg_kernel(params_ref, x_ref, o_ref):
    # params_ref: SMEM (F+1,) -> [w_0, ..., w_{F-1}, b]
    # x_ref:      VMEM (F, R, L)  feature-major, batch packed into full vregs
    # o_ref:      VMEM (R, L)     lane/sublane-dense output tile
    f_dim = x_ref.shape[0]
    # z = b + sum_f w_f * x[f]  -- pure VPU FMAs on full (R, L) vreg tiles.
    z = x_ref[0] * params_ref[0]
    for f in range(1, f_dim):
        z = z + x_ref[f] * params_ref[f]
    z = z + params_ref[f_dim]
    # Exact sigmoid with a single transcendental: sigmoid(z) = 0.5*tanh(z/2)+0.5
    o_ref[...] = (0.5 * jnp.tanh(0.5 * z) + 0.5).astype(o_ref.dtype)


@functools.partial(jax.jit, static_argnames=("block_rows", "lanes"))
def logistic_regression(x, weight, bias, *, block_rows=256, lanes=1024):
    """sigmoid(x @ weight.T + bias)  (PyTorch nn.Linear(2,1) + Sigmoid).

    x: (N, F) float, weight: (1, F) float (PyTorch layout), bias: (1,) float.
    Returns (N, 1) float32.  Implemented for out_features == 1.
    """
    n, f = x.shape
    out_dim, f_w = weight.shape
    assert f == f_w and out_dim == 1, (weight.shape, x.shape)

    # Feature-major, then pack the batch into full vregs: (F, rows, lanes).
    # Under jit the transpose + lane-pad + reshape fuse into one copy pass.
    x_t = x.astype(jnp.float32).T                            # (F, N)
    n_pad = pl.cdiv(n, lanes) * lanes
    if n_pad != n:
        x_t = jnp.pad(x_t, ((0, 0), (0, n_pad - n)))         # pads < `lanes` elems
    rows = n_pad // lanes
    x3 = x_t.reshape(f, rows, lanes)                         # free row-major reshape

    # Rows per block: full-sublane (multiple of 8) and, for large inputs,
    # small enough that the grid has >= ~8 steps (megacore on v7x, pipelining).
    r_blk = min(block_rows, rows)
    if rows > 8:
        r_blk = min(r_blk, ((pl.cdiv(rows, 8) + 7) // 8) * 8)
    grid = (pl.cdiv(rows, r_blk),)

    # 3 f32 scalars [w0, ..., w_{F-1}, b] -> SMEM (no VMEM tile, no per-step DMA).
    params = jnp.concatenate(
        [weight.reshape(-1), bias.reshape(-1)]).astype(jnp.float32)  # (F+1,)

    cost = pl.CostEstimate(
        flops=(2 * f + 1) * n_pad,
        transcendentals=n_pad,
        bytes_accessed=(f + 1) * 4 * n_pad,
    )

    out = pl.pallas_call(
        _logreg_kernel,
        out_shape=jax.ShapeDtypeStruct((rows, lanes), jnp.float32),
        grid_spec=pltpu.PrefetchScalarGridSpec(
            num_scalar_prefetch=0,
            grid=grid,
            in_specs=[
                # whole params array resident in SMEM
                pl.BlockSpec(memory_space=pltpu.MemorySpace.SMEM),
                # x tile: full feature extent, r_blk x lanes batch elements
                pl.BlockSpec((f, r_blk, lanes), lambda i: (0, i, 0)),
            ],
            out_specs=pl.BlockSpec((r_blk, lanes), lambda i: (i, 0)),
        ),
        compiler_params=pltpu.CompilerParams(
            dimension_semantics=("parallel",)),   # megacore sharding on v7x
        cost_estimate=cost,
    )(params, x3)

    # Back to PyTorch convention (N, 1), slicing off lane padding.
    return out.reshape(-1)[:n].reshape(n, out_dim)


if __name__ == "__main__":
    key = jax.random.PRNGKey(0)
    k_x, k_w, k_b, k_x2 = jax.random.split(key, 4)

    # Module shapes: Linear(2, 1) -> weight (1, 2), bias (1,)
    batch, in_features, out_features = 8, 2, 1
    x = jax.random.normal(k_x, (batch, in_features), dtype=jnp.float32)
    # Deterministic init mimicking nn.Linear's uniform(-1/sqrt(f), 1/sqrt(f))
    bound = 1.0 / (in_features ** 0.5)
    weight = jax.random.uniform(k_w, (out_features, in_features),
                                minval=-bound, maxval=bound, dtype=jnp.float32)
    bias = jax.random.uniform(k_b, (out_features,),
                              minval=-bound, maxval=bound, dtype=jnp.float32)

    out = logistic_regression(x, weight, bias)
    jax.block_until_ready(out)

    ref = jax.nn.sigmoid(x @ weight.T + bias)
    assert out.shape == (batch, out_features), out.shape
    assert jnp.allclose(out, ref, atol=1e-5), "mismatch vs reference"

    # Secondary check exercising multi-row packing and a ragged last block.
    batch2 = 10000
    x2 = jax.random.normal(k_x2, (batch2, in_features), dtype=jnp.float32)
    out2 = logistic_regression(x2, weight, bias)
    jax.block_until_ready(out2)
    ref2 = jax.nn.sigmoid(x2 @ weight.T + bias)
    assert out2.shape == (batch2, out_features), out2.shape
    assert jnp.allclose(out2, ref2, atol=1e-5), "mismatch vs reference (ragged)"

    print("KERNEL_OK")
</pallas_src>

<mosaic_0001>
module attributes {stable_mosaic.version = 11 : i64} {
  func.func @_logreg_kernel(%arg0: i32, %arg1: memref<3xf32, #tpu.memory_space<smem>>, %arg2: memref<2x1x1024xf32, #tpu.memory_space<vmem>>, %arg3: memref<1x1024xf32, #tpu.memory_space<vmem>>) attributes {dimension_semantics = [#tpu.dimension_semantics<parallel>], iteration_bounds = array<i64: 1>, scalar_prefetch = 0 : i64, scratch_operands = 0 : i64, tpu.core_type = #tpu.core_type<tc>, window_params = [{transform_indices = @transform_0, window_bounds = array<i64: 3>}, {transform_indices = @transform_1, window_bounds = array<i64: 2, 1, 1024>}, {transform_indices = @transform_2, window_bounds = array<i64: 1, 1024>}]} {
    %c0 = arith.constant 0 : index
    %c0_0 = arith.constant 0 : index
    %c0_1 = arith.constant 0 : index
    %0 = vector.load %arg2[%c0, %c0_0, %c0_1] : memref<2x1x1024xf32, #tpu.memory_space<vmem>>, vector<1x1x1024xf32>
    %1 = vector.shape_cast %0 : vector<1x1x1024xf32> to vector<1x1024xf32>
    %c0_2 = arith.constant 0 : index
    %2 = memref.load %arg1[%c0_2] : memref<3xf32, #tpu.memory_space<smem>>
    %3 = vector.broadcast %2 : f32 to vector<1x1024xf32>
    %4 = arith.mulf %1, %3 : vector<1x1024xf32>
    %c1 = arith.constant 1 : index
    %c0_3 = arith.constant 0 : index
    %c0_4 = arith.constant 0 : index
    %5 = vector.load %arg2[%c1, %c0_3, %c0_4] : memref<2x1x1024xf32, #tpu.memory_space<vmem>>, vector<1x1x1024xf32>
    %6 = vector.shape_cast %5 : vector<1x1x1024xf32> to vector<1x1024xf32>
    %c1_5 = arith.constant 1 : index
    %7 = memref.load %arg1[%c1_5] : memref<3xf32, #tpu.memory_space<smem>>
    %8 = vector.broadcast %7 : f32 to vector<1x1024xf32>
    %9 = arith.mulf %6, %8 : vector<1x1024xf32>
    %10 = arith.addf %4, %9 : vector<1x1024xf32>
    %c2 = arith.constant 2 : index
    %11 = memref.load %arg1[%c2] : memref<3xf32, #tpu.memory_space<smem>>
    %12 = vector.broadcast %11 : f32 to vector<1x1024xf32>
    %13 = arith.addf %10, %12 : vector<1x1024xf32>
    %cst = arith.constant 5.000000e-01 : f32
    %14 = vector.broadcast %cst : f32 to vector<1x1024xf32>
    %15 = arith.mulf %14, %13 : vector<1x1024xf32>
    %16 = math.tanh %15 : vector<1x1024xf32>
    %cst_6 = arith.constant 5.000000e-01 : f32
    %17 = vector.broadcast %cst_6 : f32 to vector<1x1024xf32>
    %18 = arith.mulf %17, %16 : vector<1x1024xf32>
    %cst_7 = arith.constant 5.000000e-01 : f32
    %19 = vector.broadcast %cst_7 : f32 to vector<1x1024xf32>
    %20 = arith.addf %18, %19 : vector<1x1024xf32>
    %c0_8 = arith.constant 0 : index
    %c0_9 = arith.constant 0 : index
    %21 = vector.load %arg3[%c0_8, %c0_9] : memref<1x1024xf32, #tpu.memory_space<vmem>>, vector<1x1024xf32>
    tpu.vector_store %arg3[%c0_8, %c0_9], %20 {strides = array<i32>} : memref<1x1024xf32, #tpu.memory_space<vmem>>, vector<1x1024xf32>,
    return
  }
  func.func @transform_0(%arg0: i32) -> i32 {
    %c0_i32 = arith.constant 0 : i32
    %c0_i32_0 = arith.constant 0 : i32
    return %c0_i32 : i32
  }
  func.func @transform_1(%arg0: i32) -> (i32, i32, i32) {
    %c0_i32 = arith.constant 0 : i32
    %c0_i32_0 = arith.constant 0 : i32
    %c0_i32_1 = arith.constant 0 : i32
    return %c0_i32, %arg0, %c0_i32_0 : i32, i32, i32
  }
  func.func @transform_2(%arg0: i32) -> (i32, i32) {
    %c0_i32 = arith.constant 0 : i32
    %c0_i32_0 = arith.constant 0 : i32
    return %arg0, %c0_i32 : i32, i32
  }
}

</mosaic_0001>

<bundles_post_ra>
// kernel: logistic_regression.1
= control target key start
LH: loop header
LB: loop body
LE: loop exit
PB: predicated region body
PF: predicated region fallthrough
CT: control target
= control target key end

     0   :  { %7 = vsyncpa [#allocation3], 0  ;;  %s95_s0 = inlined_call_operand.vmem [shape: f32[3], index: 0, kind: input, shape index: {}]   ;;  %s96_s1 = inlined_call_operand.vmem [shape: f32[2,1,1024], index: 1, kind: input, shape index: {}]   ;;  %s97_s2 = inlined_call_operand.vmem [shape: f32[1,1024], index: 2, kind: output, shape index: {}]  }
   0x1   :  { %s14_s11 = sshll.u32 %s95_s0, 4  ;;  %s15_s11 = int_to_ptr.vmem [resolvable:$true] %s14_s11 }
   0x2   :  { %s53_s12 = scalar_lea.vmem %s15_s11, 16  ;;  %p58_p1 = scmp.lt.s32.totalorder %s15_s11, %s15_s11 }
   0x3   :  { %p54_p0 = scmp.ne.s32.totalorder %s15_s11, %s53_s12  ;;  %p59_p2 = scmp.lt.s32.totalorder %s53_s12, %s53_s12 }
   0x5   :  { %p60_p3 = por %p59_p2, %p58_p1 }
   0x7   :  { %p61_p4 = pnand %p60_p3, %p54_p0 }
   0x9   :  { %64 = shalt.err (!%p61_p4)
}
   0xa   :  { %s67_s13 = smov [#allocation2]  }
   0xb   :  { %17 = dma.vmem_to_smem %s15_s11, 16, %s67_s13, [#allocation3]  }
   0xc   :  { %65 = dma.done.wait [#allocation3], 16  }
   0xd   :  { %66 = vsyncadd [#allocation3], 4294967280 }
   0xe   :  { %23 = sfence }
   0xf   :  { %s25_s14 = sld [smem:[#allocation2]]  ;;  %s48_s15 = sld [smem:[#allocation2 + $0x1]]  ;;  %v24_v0 = vld [vmem:[%s96_s1] sm:$0xff]  ;;  %v47_v1 = vld [vmem:[%s96_s1 + $0x8] sm:$0xff] }
  0x10   :  { %s49_s16 = sld [smem:[#allocation2 + $0x2]] }
  0x15   :  { %v26_v2 = vstv %s25_s14  ;;  %v31_v3 = vstv %s48_s15 }
  0x16   :  { %v27_v4 = vmul.f32 %v26_v2, %v24_v0  ;;  %v32_v5 = vmul.f32 %v47_v1, %v31_v3  ;;  %v35_v6 = vstv %s49_s16 }
  0x18   :  { %v33_v7 = vadd.f32 %v32_v5, %v27_v4 }
  0x1a   :  { %v36_v8 = vadd.f32 %v35_v6, %v33_v7 }
  0x1c   :  { %v37_v9 = vmul.f32 0.5, %v36_v8 }
  0x1e   :  { %51 = vtanh.f32 %v37_v9 }
  0x28   :  { %v52_v10 = vpop.eup %51 }
  0x29   :  { %v39_v11 = vmul.f32 0.5, %v52_v10 }
  0x2b   :  { %v40_v12 = vadd.f32 0.5, %v39_v11 }
  0x2d   :  { %41 = vst [vmem:[%s97_s2] sm:$0xff] %v40_v12 }
  0x2e   :  { %46 = vsyncpa [#allocation3], 1 }

</bundles_post_ra>
